<compile_context>
chip_gen: v6e
topology: v6e:2x2x1
jax: 0.10.0
libtpu: 0.0.40
codegen_flags: <defaults>
</compile_context>

<pallas_src>
import functools

import numpy as np
import jax
import jax.numpy as jnp
from jax.experimental import pallas as pl
from jax.experimental.pallas import tpu as pltpu

LN_EPS = 1e-5     # torch.nn.LayerNorm default
LANE = 128
SUBLANE = 8


def _round_up(x, m):
    return (x + m - 1) // m * m


def _layernorm_padzero(h, gamma, beta, real_dim):
    """LayerNorm over the first `real_dim` lanes of a (rows, P) f32 block.

    Relies on the invariant that lanes >= real_dim of `h` are exactly zero and
    that gamma/beta are zero there, so no lane mask is needed and padded lanes
    of the output stay zero.
    """
    inv_d = 1.0 / real_dim
    mean = jnp.sum(h, axis=-1, keepdims=True) * inv_d
    ex2 = jnp.sum(h * h, axis=-1, keepdims=True) * inv_d
    var = ex2 - mean * mean
    return (h - mean) * jax.lax.rsqrt(var + LN_EPS) * gamma + beta


def actor_kernel(x_ref, w_ref, o_ref, *, dims, rows):
    (in_d, fc1_d, fc2_d, act_d, in_p8, P, act_p8) = dims
    (r_w1, r_w2, r_w3t, r_vec) = rows

    # Static ref slices (free views into the resident VMEM parameter slab).
    w1 = w_ref[r_w1:r_w1 + in_p8, :]            # (in_p8, P)
    w2 = w_ref[r_w2:r_w2 + P, :]                # (P, P)
    w3t = w_ref[r_w3t:r_w3t + act_p8, :]        # (act_p8, P)  == w3^T (padded)
    b1 = w_ref[r_vec + 0:r_vec + 1, :]          # (1, P)
    g1 = w_ref[r_vec + 1:r_vec + 2, :]
    be1 = w_ref[r_vec + 2:r_vec + 3, :]
    b2 = w_ref[r_vec + 3:r_vec + 4, :]
    g2 = w_ref[r_vec + 4:r_vec + 5, :]
    be2 = w_ref[r_vec + 5:r_vec + 6, :]
    b3 = w_ref[r_vec + 6:r_vec + 7, 0:act_p8]   # (1, act_p8)

    # fc1 + LayerNorm + ReLU (all f32; MXU accumulate in f32)
    x = x_ref[...]                               # (tb, in_p8) f32
    h = jnp.dot(x, w1, preferred_element_type=jnp.float32) + b1
    h = _layernorm_padzero(h, g1, be1, fc1_d)
    h = jnp.maximum(h, 0.0)

    # fc2 + LayerNorm + ReLU
    h = jnp.dot(h, w2, preferred_element_type=jnp.float32) + b2
    h = _layernorm_padzero(h, g2, be2, fc2_d)
    h = jnp.maximum(h, 0.0)

    # mu + tanh.  w3 is stored transposed so the contraction is the standard
    # "A @ B^T" dot_general form (lane-contracting both operands).
    mu = jax.lax.dot_general(h, w3t, (((1,), (1,)), ((), ())),
                             preferred_element_type=jnp.float32) + b3
    o_ref[...] = jnp.tanh(mu)


def prepare_params(params):
    """Pack all parameters into one f32, lane-dense, zero-padded slab.

    Slab rows: [w1 (in_p8 rows) | w2 (P rows) | w3^T (act_p8 rows) |
                b1, g1, be1, b2, g2, be2, b3 (1 row each) | zero pad to 8].
    All padding is EXACTLY zero (see invariant at the top of this file).
    """
    in_d, fc1_d = params["w1"].shape
    fc2_d = params["w2"].shape[1]
    act_d = params["w3"].shape[1]

    in_p8 = _round_up(in_d, SUBLANE)
    act_p8 = _round_up(act_d, SUBLANE)
    P = _round_up(max(fc1_d, fc2_d), LANE)   # shared padded hidden width

    def pad2(a, nrows, ncols):
        a = jnp.asarray(a, jnp.float32)
        return jnp.pad(a, ((0, nrows - a.shape[0]), (0, ncols - a.shape[1])))

    w1 = pad2(params["w1"], in_p8, P)
    w2 = pad2(params["w2"], P, P)
    w3t = pad2(params["w3"].T, act_p8, P)
    vec_rows = [pad2(params[k], 1, P)
                for k in ("b1", "g1", "be1", "b2", "g2", "be2", "b3")]

    slab = jnp.concatenate([w1, w2, w3t] + vec_rows, axis=0)
    n_rows = slab.shape[0]
    n_rows_p = _round_up(n_rows, SUBLANE)
    slab = jnp.pad(slab, ((0, n_rows_p - n_rows), (0, 0)))

    rows = (0, in_p8, in_p8 + P, in_p8 + P + act_p8)
    dims = (in_d, fc1_d, fc2_d, act_d, in_p8, P, act_p8)
    return {"slab": slab, "dims": dims, "rows": rows}


def actor_forward(state, prepped, *, batch_tile=2048):
    """state: (B, input_dim) f32 -> (B, no_actions) f32."""
    (in_d, fc1_d, fc2_d, act_d, in_p8, P, act_p8) = prepped["dims"]
    slab = prepped["slab"]
    n_rows_p = slab.shape[0]

    B = state.shape[0]
    B_p8 = _round_up(max(B, 1), SUBLANE)

    # Choose the batch tile: big (amortizes ~0.35us/step overhead), but ensure
    # >= 2 grid steps when the batch allows it so ("parallel",) uses both
    # TensorCores on v7x.  Tiles are sized to avoid padded-row waste.
    bt = max(_round_up(batch_tile, SUBLANE), SUBLANE)
    n_steps = max(pl.cdiv(B_p8, bt), 1)
    if B_p8 >= 2 * SUBLANE:
        n_steps = max(n_steps, 2)
    tb = _round_up(pl.cdiv(B_p8, n_steps), SUBLANE)
    B_p = _round_up(B_p8, tb)
    grid = (B_p // tb,)

    # Pad only the batch (sublane) dim and the tiny in_d->in_p8 remainder;
    # no 128-lane padding of the input in HBM.
    x = jnp.pad(state.astype(jnp.float32),
                ((0, B_p - B), (0, in_p8 - in_d)))

    # Advisory cost estimate from the REAL (unpadded) dims.
    flops = 2 * B * (in_d * fc1_d + fc1_d * fc2_d + fc2_d * act_d)
    transcendentals = B * (act_d + 2)          # tanh per action + rsqrt per LN
    bytes_accessed = 4 * (B * in_d + B * act_d
                          + in_d * fc1_d + fc1_d * fc2_d + fc2_d * act_d
                          + 3 * fc1_d + 3 * fc2_d + act_d)

    kernel = functools.partial(actor_kernel, dims=prepped["dims"],
                               rows=prepped["rows"])

    out = pl.pallas_call(
        kernel,
        out_shape=jax.ShapeDtypeStruct((B_p, act_p8), jnp.float32),
        grid=grid,
        in_specs=[
            # state, batch-tiled; last dim equals the full array dim (legal).
            pl.BlockSpec((tb, in_p8), lambda i: (i, 0)),
            # resident parameter slab (same block every step -> fetched once).
            pl.BlockSpec((n_rows_p, P), lambda i: (0, 0)),
        ],
        # narrow output: last dim equals the full array dim; HBM-contiguous DMA.
        out_specs=pl.BlockSpec((tb, act_p8), lambda i: (i, 0)),
        compiler_params=pltpu.CompilerParams(
            dimension_semantics=("parallel",)),
        cost_estimate=pl.CostEstimate(
            flops=flops,
            transcendentals=transcendentals,
            bytes_accessed=bytes_accessed),
    )(x, slab)

    return out[:B, :act_d]


def init_params(key, input_dim, fc1_dims, fc2_dims, no_actions):
    """Deterministic init matching ActorNetwork.__init__ semantics.

    PyTorch stores Linear weights as (out, in); here we store (in, out).
    fc*_range uses weight.size()[0] == out_features, exactly as in the module.
    """
    ks = jax.random.split(key, 6)

    f1 = 1.0 / np.sqrt(fc1_dims)
    w1 = jax.random.uniform(ks[0], (input_dim, fc1_dims), jnp.float32, -f1, f1)
    b1 = jax.random.uniform(ks[1], (1, fc1_dims), jnp.float32, -f1, f1)

    f2 = 1.0 / np.sqrt(fc2_dims)
    w2 = jax.random.uniform(ks[2], (fc1_dims, fc2_dims), jnp.float32, -f2, f2)
    b2 = jax.random.uniform(ks[3], (1, fc2_dims), jnp.float32, -f2, f2)

    f3 = 0.003
    w3 = jax.random.uniform(ks[4], (fc2_dims, no_actions), jnp.float32, -f3, f3)
    b3 = jax.random.uniform(ks[5], (1, no_actions), jnp.float32, -f3, f3)

    return {
        "w1": w1, "b1": b1,
        "g1": jnp.ones((1, fc1_dims), jnp.float32),
        "be1": jnp.zeros((1, fc1_dims), jnp.float32),
        "w2": w2, "b2": b2,
        "g2": jnp.ones((1, fc2_dims), jnp.float32),
        "be2": jnp.zeros((1, fc2_dims), jnp.float32),
        "w3": w3, "b3": b3,
    }


def _ln_ref(h, g, b):
    m = jnp.mean(h, axis=-1, keepdims=True)
    v = jnp.mean((h - m) ** 2, axis=-1, keepdims=True)
    return (h - m) / jnp.sqrt(v + LN_EPS) * g + b


def actor_forward_ref_f32(state, p):
    """Pure f32 JAX reference of the module's forward pass."""
    h = state @ p["w1"] + p["b1"]
    h = jax.nn.relu(_ln_ref(h, p["g1"], p["be1"]))
    h = h @ p["w2"] + p["b2"]
    h = jax.nn.relu(_ln_ref(h, p["g2"], p["be2"]))
    return jnp.tanh(h @ p["w3"] + p["b3"])


if __name__ == "__main__":
    key = jax.random.PRNGKey(0)
    k_params, k_state, k_state2 = jax.random.split(key, 3)

    B, input_dim, fc1_dims, fc2_dims, no_actions = 2, 8, 32, 32, 4
    params = init_params(k_params, input_dim, fc1_dims, fc2_dims, no_actions)
    prepped = prepare_params(params)

    # Small deployed-size batch (single grid step).
    state = jax.random.normal(k_state, (B, input_dim), jnp.float32)
    out = jax.block_until_ready(actor_forward(state, prepped))
    ref = jax.block_until_ready(actor_forward_ref_f32(state, params))
    np.testing.assert_allclose(np.asarray(out), np.asarray(ref),
                               rtol=1e-3, atol=1e-3)

    # Slightly larger batch to exercise the multi-step ("parallel") grid path.
    state2 = jax.random.normal(k_state2, (64, input_dim), jnp.float32)
    out2 = jax.block_until_ready(actor_forward(state2, prepped))
    ref2 = jax.block_until_ready(actor_forward_ref_f32(state2, params))
    np.testing.assert_allclose(np.asarray(out2), np.asarray(ref2),
                               rtol=1e-3, atol=1e-3)

    print("KERNEL_OK")
</pallas_src>

<mosaic_0001>
module attributes {stable_mosaic.version = 11 : i64} {
  func.func @actor_kernel(%arg0: i32, %arg1: memref<8x8xf32, #tpu.memory_space<vmem>>, %arg2: memref<152x128xf32, #tpu.memory_space<vmem>>, %arg3: memref<8x8xf32, #tpu.memory_space<vmem>>) attributes {dimension_semantics = [#tpu.dimension_semantics<parallel>], iteration_bounds = array<i64: 1>, scalar_prefetch = 0 : i64, scratch_operands = 0 : i64, tpu.core_type = #tpu.core_type<tc>, window_params = [{transform_indices = @transform_0, window_bounds = array<i64: 8, 8>}, {pipeline_mode = #tpu.pipeline_mode<synchronous>, transform_indices = @transform_1, window_bounds = array<i64: 152, 128>}, {transform_indices = @transform_2, window_bounds = array<i64: 8, 8>}]} {
    %c0 = arith.constant 0 : index
    %c0_0 = arith.constant 0 : index
    %0 = vector.load %arg2[%c0, %c0_0] : memref<152x128xf32, #tpu.memory_space<vmem>>, vector<8x128xf32>
    %c8 = arith.constant 8 : index
    %c0_1 = arith.constant 0 : index
    %1 = vector.load %arg2[%c8, %c0_1] : memref<152x128xf32, #tpu.memory_space<vmem>>, vector<128x128xf32>
    %c136 = arith.constant 136 : index
    %c0_2 = arith.constant 0 : index
    %2 = vector.load %arg2[%c136, %c0_2] : memref<152x128xf32, #tpu.memory_space<vmem>>, vector<8x128xf32>
    %c144 = arith.constant 144 : index
    %c0_3 = arith.constant 0 : index
    %3 = vector.load %arg2[%c144, %c0_3] : memref<152x128xf32, #tpu.memory_space<vmem>>, vector<1x128xf32>
    %c145 = arith.constant 145 : index
    %c0_4 = arith.constant 0 : index
    %4 = vector.load %arg2[%c145, %c0_4] : memref<152x128xf32, #tpu.memory_space<vmem>>, vector<1x128xf32>
    %c146 = arith.constant 146 : index
    %c0_5 = arith.constant 0 : index
    %5 = vector.load %arg2[%c146, %c0_5] : memref<152x128xf32, #tpu.memory_space<vmem>>, vector<1x128xf32>
    %c147 = arith.constant 147 : index
    %c0_6 = arith.constant 0 : index
    %6 = vector.load %arg2[%c147, %c0_6] : memref<152x128xf32, #tpu.memory_space<vmem>>, vector<1x128xf32>
    %c148 = arith.constant 148 : index
    %c0_7 = arith.constant 0 : index
    %7 = vector.load %arg2[%c148, %c0_7] : memref<152x128xf32, #tpu.memory_space<vmem>>, vector<1x128xf32>
    %c149 = arith.constant 149 : index
    %c0_8 = arith.constant 0 : index
    %8 = vector.load %arg2[%c149, %c0_8] : memref<152x128xf32, #tpu.memory_space<vmem>>, vector<1x128xf32>
    %c150 = arith.constant 150 : index
    %c0_9 = arith.constant 0 : index
    %9 = vector.load %arg2[%c150, %c0_9] : memref<152x128xf32, #tpu.memory_space<vmem>>, vector<1x8xf32>
    %c0_10 = arith.constant 0 : index
    %c0_11 = arith.constant 0 : index
    %10 = vector.load %arg1[%c0_10, %c0_11] : memref<8x8xf32, #tpu.memory_space<vmem>>, vector<8x8xf32>
    %cst = arith.constant dense<0.000000e+00> : vector<8x128xf32>
    %11 = tpu.matmul %10, %0, %cst {dimension_numbers = #tpu.dot_dimension_numbers<[1], [0], [0], [1], [0, 0, 1, 1], [], []>} : vector<8x8xf32>, vector<8x128xf32>, vector<8x128xf32> -> vector<8x128xf32>
    %12 = vector.broadcast %3 : vector<1x128xf32> to vector<8x128xf32>
    %13 = arith.addf %11, %12 : vector<8x128xf32>
    %cst_12 = arith.constant dense<0.000000e+00> : vector<8xf32>
    %14 = vector.multi_reduction <add>, %13, %cst_12 [1] : vector<8x128xf32> to vector<8xf32>
    %15 = vector.shape_cast %14 : vector<8xf32> to vector<8x1xf32>
    %cst_13 = arith.constant 3.125000e-02 : f32
    %16 = vector.broadcast %cst_13 : f32 to vector<8x1xf32>
    %17 = arith.mulf %15, %16 : vector<8x1xf32>
    %18 = arith.mulf %13, %13 : vector<8x128xf32>
    %cst_14 = arith.constant dense<0.000000e+00> : vector<8xf32>
    %19 = vector.multi_reduction <add>, %18, %cst_14 [1] : vector<8x128xf32> to vector<8xf32>
    %20 = vector.shape_cast %19 : vector<8xf32> to vector<8x1xf32>
    %cst_15 = arith.constant 3.125000e-02 : f32
    %21 = vector.broadcast %cst_15 : f32 to vector<8x1xf32>
    %22 = arith.mulf %20, %21 : vector<8x1xf32>
    %23 = arith.mulf %17, %17 : vector<8x1xf32>
    %24 = arith.subf %22, %23 : vector<8x1xf32>
    %25 = vector.broadcast %17 : vector<8x1xf32> to vector<8x128xf32>
    %26 = arith.subf %13, %25 : vector<8x128xf32>
    %cst_16 = arith.constant 9.99999974E-6 : f32
    %27 = vector.broadcast %cst_16 : f32 to vector<8x1xf32>
    %28 = arith.addf %24, %27 : vector<8x1xf32>
    %29 = math.rsqrt %28 : vector<8x1xf32>
    %30 = vector.broadcast %29 : vector<8x1xf32> to vector<8x128xf32>
    %31 = arith.mulf %26, %30 : vector<8x128xf32>
    %32 = vector.broadcast %4 : vector<1x128xf32> to vector<8x128xf32>
    %33 = arith.mulf %31, %32 : vector<8x128xf32>
    %34 = vector.broadcast %5 : vector<1x128xf32> to vector<8x128xf32>
    %35 = arith.addf %33, %34 : vector<8x128xf32>
    %cst_17 = arith.constant 0.000000e+00 : f32
    %36 = vector.broadcast %cst_17 : f32 to vector<8x128xf32>
    %37 = arith.maximumf %35, %36 : vector<8x128xf32>
    %cst_18 = arith.constant dense<0.000000e+00> : vector<8x128xf32>
    %38 = tpu.matmul %37, %1, %cst_18 {dimension_numbers = #tpu.dot_dimension_numbers<[1], [0], [0], [1], [0, 0, 1, 1], [], []>} : vector<8x128xf32>, vector<128x128xf32>, vector<8x128xf32> -> vector<8x128xf32>
    %39 = vector.broadcast %6 : vector<1x128xf32> to vector<8x128xf32>
    %40 = arith.addf %38, %39 : vector<8x128xf32>
    %cst_19 = arith.constant dense<0.000000e+00> : vector<8xf32>
    %41 = vector.multi_reduction <add>, %40, %cst_19 [1] : vector<8x128xf32> to vector<8xf32>
    %42 = vector.shape_cast %41 : vector<8xf32> to vector<8x1xf32>
    %cst_20 = arith.constant 3.125000e-02 : f32
    %43 = vector.broadcast %cst_20 : f32 to vector<8x1xf32>
    %44 = arith.mulf %42, %43 : vector<8x1xf32>
    %45 = arith.mulf %40, %40 : vector<8x128xf32>
    %cst_21 = arith.constant dense<0.000000e+00> : vector<8xf32>
    %46 = vector.multi_reduction <add>, %45, %cst_21 [1] : vector<8x128xf32> to vector<8xf32>
    %47 = vector.shape_cast %46 : vector<8xf32> to vector<8x1xf32>
    %cst_22 = arith.constant 3.125000e-02 : f32
    %48 = vector.broadcast %cst_22 : f32 to vector<8x1xf32>
    %49 = arith.mulf %47, %48 : vector<8x1xf32>
    %50 = arith.mulf %44, %44 : vector<8x1xf32>
    %51 = arith.subf %49, %50 : vector<8x1xf32>
    %52 = vector.broadcast %44 : vector<8x1xf32> to vector<8x128xf32>
    %53 = arith.subf %40, %52 : vector<8x128xf32>
    %cst_23 = arith.constant 9.99999974E-6 : f32
    %54 = vector.broadcast %cst_23 : f32 to vector<8x1xf32>
    %55 = arith.addf %51, %54 : vector<8x1xf32>
    %56 = math.rsqrt %55 : vector<8x1xf32>
    %57 = vector.broadcast %56 : vector<8x1xf32> to vector<8x128xf32>
    %58 = arith.mulf %53, %57 : vector<8x128xf32>
    %59 = vector.broadcast %7 : vector<1x128xf32> to vector<8x128xf32>
    %60 = arith.mulf %58, %59 : vector<8x128xf32>
    %61 = vector.broadcast %8 : vector<1x128xf32> to vector<8x128xf32>
    %62 = arith.addf %60, %61 : vector<8x128xf32>
    %cst_24 = arith.constant 0.000000e+00 : f32
    %63 = vector.broadcast %cst_24 : f32 to vector<8x128xf32>
    %64 = arith.maximumf %62, %63 : vector<8x128xf32>
    %cst_25 = arith.constant dense<0.000000e+00> : vector<8x8xf32>
    %65 = tpu.matmul %64, %2, %cst_25 {dimension_numbers = #tpu.dot_dimension_numbers<[1], [1], [0], [0], [0, 0, 1, 0], [], []>} : vector<8x128xf32>, vector<8x128xf32>, vector<8x8xf32> -> vector<8x8xf32>
    %66 = vector.broadcast %9 : vector<1x8xf32> to vector<8x8xf32>
    %67 = arith.addf %65, %66 : vector<8x8xf32>
    %68 = math.tanh %67 : vector<8x8xf32>
    %c0_26 = arith.constant 0 : index
    %c0_27 = arith.constant 0 : index
    %69 = vector.load %arg3[%c0_26, %c0_27] : memref<8x8xf32, #tpu.memory_space<vmem>>, vector<8x8xf32>
    tpu.vector_store %arg3[%c0_26, %c0_27], %68 {strides = array<i32>} : memref<8x8xf32, #tpu.memory_space<vmem>>, vector<8x8xf32>,
    return
  }
  func.func @transform_0(%arg0: i32) -> (i32, i32) {
    %c0_i32 = arith.constant 0 : i32
    %c0_i32_0 = arith.constant 0 : i32
    return %arg0, %c0_i32 : i32, i32
  }
  func.func @transform_1(%arg0: i32) -> (i32, i32) {
    %c0_i32 = arith.constant 0 : i32
    %c0_i32_0 = arith.constant 0 : i32
    %c0_i32_1 = arith.constant 0 : i32
    return %c0_i32, %c0_i32_0 : i32, i32
  }
  func.func @transform_2(%arg0: i32) -> (i32, i32) {
    %c0_i32 = arith.constant 0 : i32
    %c0_i32_0 = arith.constant 0 : i32
    return %arg0, %c0_i32 : i32, i32
  }
}

</mosaic_0001>

<bundles_post_ra>
// kernel: tpu_custom_call.1
= control target key start
LH: loop header
LB: loop body
LE: loop exit
PB: predicated region body
PF: predicated region fallthrough
CT: control target
= control target key end

     0   :  { %7 = vsyncpa [#allocation3], 0  ;;  %s569_s0 = inlined_call_operand.hbm [shape: f32[8,8], index: 0, kind: input, shape index: {}]   ;;  %s570_s1 = inlined_call_operand.hbm [shape: f32[152,128], index: 1, kind: input, shape index: {}]   ;;  %s571_s2 = inlined_call_operand.hbm [shape: f32[8,8], index: 2, kind: output, shape index: {}]  }
   0x1   :  { %8 = vsyncpa [#allocation6], 0 }
   0x2   :  { %9 = vsyncpa [#allocation4], 0  ;;  %s509_s9 = smov [#allocation2]   ;;  %s510_s11 = smov [#allocation5]  }
   0x3   :  { %s16_s10 = sshll.u32 %s509_s9, 4  ;;  %s25_s12 = sshll.u32 %s510_s11, 4  ;;  %s17_s10 = int_to_ptr.vmem [resolvable:$true] %s16_s10  ;;  %s26_s12 = int_to_ptr.vmem [resolvable:$true] %s25_s12 }
   0x4   :  { %s451_s13 = scalar_lea.vmem %s17_s10, 128  ;;  %p456_p1 = scmp.lt.s32.totalorder %s17_s10, %s17_s10 }
   0x5   :  { %p452_p0 = scmp.ne.s32.totalorder %s17_s10, %s451_s13  ;;  %p457_p2 = scmp.lt.s32.totalorder %s451_s13, %s451_s13 }
   0x7   :  { %p458_p3 = por %p457_p2, %p456_p1 }
   0x9   :  { %p459_p4 = pnand %p458_p3, %p452_p0 }
   0xb   :  { %462 = shalt.err (!%p459_p4)
}
   0xc   :  { %19 = dma.hbm_to_vmem [thread:$0]  %s569_s0, 128, %s17_s10, [#allocation3]  }
   0xd   :  { %s471_s16 = scalar_lea.vmem %s26_s12, 2432  ;;  %p476_p6 = scmp.lt.s32.totalorder %s26_s12, %s26_s12 }
   0xe   :  { %p472_p5 = scmp.ne.s32.totalorder %s26_s12, %s471_s16  ;;  %p477_p7 = scmp.lt.s32.totalorder %s471_s16, %s471_s16 }
  0x10   :  { %p478_p8 = por %p477_p7, %p476_p6 }
  0x12   :  { %p479_p9 = pnand %p478_p8, %p472_p5 }
  0x14   :  { %482 = shalt.err (!%p479_p9)
}
  0x15   :  { %s511_s17 = smov 128   ;;  %s512_s18 = smov 8  }
  0x16   :  { %31 = dma.hbm_to_vmem [thread:$0]  %s570_s1, 2432, %s26_s12, [#allocation6], %s511_s17, %s511_s17, %s512_s18  }
  0x17   :  { %503 = dma.done.wait [#allocation3], 128  }
  0x18   :  { %504 = vsyncadd [#allocation3], 4294967168 }
  0x19   :  { %505 = dma.done.wait [#allocation6], 2432  }
  0x1a   :  { %506 = vsyncadd [#allocation6], 4294964864  ;;  %v513_v0 = vmov 0.0   ;;  %vm514_vm0 = vmmov 0   ;;  %vm68_vm1 = vcmask 64512   ;;  %v38_v1 = vld [vmem:[#allocation5] sm:$0xff] }
  0x1b   :  { %385 = vmatprep.subr.mxu0 %v513_v0  ;;  %387 = vmatprep.mubr.msk.f32.mxu0 %vm514_vm0, %v513_v0  ;;  %v63_v2 = vld [vmem:[#allocation2] sm:$0xff]  ;;  %v356_v3 = vld [vmem:[#allocation5 + $0x90] ss:$0 sm:$0xff]  ;;  %v54_v8 = vld [vmem:[#allocation5 + $0x80] sm:$0xff]  ;;  %s515_s0 = smov [#allocation7]  }
  0x1c   :  { %390 = vmatprep.subr.mxu1 %v513_v0  ;;  %422 = vmatprep.mubr.msk.f32.mxu1 %vm514_vm0, %v513_v0  ;;  %v53_v9 = vld [vmem:[#allocation5 + $0x78] sm:$0xff]  ;;  %v52_v10 = vld [vmem:[#allocation5 + $0x70] sm:$0xff]  ;;  %v51_v11 = vld [vmem:[#allocation5 + $0x68] sm:$0xff]  ;;  %s346_s1 = sshll.u32 %s515_s0, 4  ;;  %s347_s1 = int_to_ptr.vmem [resolvable:$true] %s346_s1 }
  0x1d   :  { %386 = vmatpush3.msra.mxu0 %v38_v1  ;;  %391 = vmatpush3.msra.mxu1 %v54_v8  ;;  %v50_v12 = vld [vmem:[#allocation5 + $0x60] sm:$0xff]  ;;  %v49_v13 = vld [vmem:[#allocation5 + $0x58] sm:$0xff]  ;;  %v48_v14 = vld [vmem:[#allocation5 + $0x50] sm:$0xff]  ;;  %s483_s21 = scalar_lea.vmem %s347_s1, 128  ;;  %p488_p11 = scmp.lt.s32.totalorder %s347_s1, %s347_s1 }
  0x1e   :  { %388 = vmatmul.mubr.msk.f32.vlgmr.msra.gmra.mxu0 %vm68_vm1, %v63_v2  ;;  %425 = vmatprep.subr.mxu0 %v513_v0  ;;  %v47_v15 = vld [vmem:[#allocation5 + $0x48] sm:$0xff]  ;;  %v46_v16 = vld [vmem:[#allocation5 + $0x40] sm:$0xff]  ;;  %v45_v17 = vld [vmem:[#allocation5 + $0x38] sm:$0xff]  ;;  %p484_p10 = scmp.ne.s32.totalorder %s347_s1, %s483_s21  ;;  %p489_p12 = scmp.lt.s32.totalorder %s483_s21, %s483_s21 }
  0x1f   :  { %427 = vmatprep.mubr.msk.f32.mxu0 %vm514_vm0, %v513_v0  ;;  %392 = vmatprep.subr.mxu1 %v513_v0  ;;  %v44_v18 = vld [vmem:[#allocation5 + $0x30] sm:$0xff]  ;;  %v43_v19 = vld [vmem:[#allocation5 + $0x28] sm:$0xff]  ;;  %v42_v20 = vld [vmem:[#allocation5 + $0x20] sm:$0xff] }
  0x20   :  { %393 = vmatpush3.msra.mxu1 %v53_v9  ;;  %v41_v21 = vld [vmem:[#allocation5 + $0x18] sm:$0xff]  ;;  %v40_v22 = vld [vmem:[#allocation5 + $0x10] sm:$0xff]  ;;  %v39_v23 = vld [vmem:[#allocation5 + $0x8] sm:$0xff]  ;;  %p490_p13 = por %p489_p12, %p488_p11 }
  0x21   :  { %394 = vmatprep.subr.mxu1 %v513_v0  ;;  %v358_v33 = vld [vmem:[#allocation5 + $0x91] ss:$0 sm:$0xff]  ;;  %v359_v35 = vld [vmem:[#allocation5 + $0x92] ss:$0 sm:$0xff]  ;;  %v360_v39 = vld [vmem:[#allocation5 + $0x93] ss:$0 sm:$0xff] }
  0x22   :  { %395 = vmatpush3.msra.mxu1 %v52_v10  ;;  %v55_v44 = vld [vmem:[#allocation5 + $0x88] sm:$0xff]  ;;  %v361_v54 = vld [vmem:[#allocation5 + $0x94] ss:$0 sm:$0xff]  ;;  %v362_v56 = vld [vmem:[#allocation5 + $0x95] ss:$0 sm:$0xff]  ;;  %p491_p0 = pnand %p490_p13, %p484_p10 }
  0x23   :  { %396 = vmatprep.subr.mxu1 %v513_v0  ;;  %426 = vmatpush3.xpose.msra.mxu0 %v55_v44  ;;  %v363_v60 = vld [vmem:[#allocation5 + $0x96] ss:$0 sm:$0xff] }
  0x24   :  { %397 = vmatpush3.msra.mxu1 %v51_v11 }
  0x25   :  { %398 = vmatprep.subr.mxu1 %v513_v0 }
  0x26   :  { %399 = vmatpush3.msra.mxu1 %v50_v12 }
  0x27   :  { %400 = vmatprep.subr.mxu1 %v513_v0 }
  0x28   :  { %401 = vmatpush3.msra.mxu1 %v49_v13 }
  0x29   :  { %402 = vmatprep.subr.mxu1 %v513_v0 }
  0x2a   :  { %403 = vmatpush3.msra.mxu1 %v48_v14 }
  0x2b   :  { %404 = vmatprep.subr.mxu1 %v513_v0 }
  0x2c   :  { %405 = vmatpush3.msra.mxu1 %v47_v15 }
  0x2d   :  { %406 = vmatprep.subr.mxu1 %v513_v0 }
  0x2e   :  { %407 = vmatpush3.msra.mxu1 %v46_v16 }
  0x2f   :  { %408 = vmatprep.subr.mxu1 %v513_v0 }
  0x30   :  { %409 = vmatpush3.msra.mxu1 %v45_v17 }
  0x31   :  { %410 = vmatprep.subr.mxu1 %v513_v0 }
  0x32   :  { %411 = vmatpush3.msra.mxu1 %v44_v18 }
  0x33   :  { %412 = vmatprep.subr.mxu1 %v513_v0 }
  0x34   :  { %413 = vmatpush3.msra.mxu1 %v43_v19 }
  0x35   :  { %414 = vmatprep.subr.mxu1 %v513_v0 }
  0x36   :  { %415 = vmatpush3.msra.mxu1 %v42_v20 }
  0x37   :  { %416 = vmatprep.subr.mxu1 %v513_v0 }
  0x38   :  { %417 = vmatpush3.msra.mxu1 %v41_v21 }
  0x39   :  { %418 = vmatprep.subr.mxu1 %v513_v0 }
  0x3a   :  { %419 = vmatpush3.msra.mxu1 %v40_v22 }
  0x3b   :  { %420 = vmatprep.subr.mxu1 %v513_v0 }
  0x3c   :  { %421 = vmatpush3.msra.mxu1 %v39_v23 }
  0xde   :  { %v138_v4 = vpop.f32.mrf.mxu0 }
  0xdf   :  { %v544_v5 = vadd.f32 %v356_v3, %v138_v4 }
  0xe0   :  { %v389_v6 = vpop.f32.mrf.mxu0 }
  0xe1   :  { %142 = vadd.xlane.f32.xlu0 %v544_v5  ;;  %v145_v7 = vmul.f32 %v544_v5, %v544_v5 }
  0xe5   :  { %146 = vadd.xlane.f32.xlu0 %v145_v7 }
 0x16a   :  { %v143_v24 = vpop.xlane.xlu0 %142 }
 0x16b   :  { %v144_v25 = vmul.f32 0.03125, %v143_v24 }
 0x16d   :  { %v149_v27 = vmul.f32 %v144_v25, %v144_v25  ;;  %v151_v31 = vsub.f32 %v544_v5, %v144_v25 }
 0x16e   :  { %v147_v26 = vpop.xlane.xlu0 %146 }
 0x16f   :  { %v148_v28 = vmul.f32 0.03125, %v147_v26 }
 0x171   :  { %v150_v29 = vsub.f32 %v148_v28, %v149_v27 }
 0x173   :  { %v152_v30 = vadd.f32 1e-05, %v150_v29 }
 0x175   :  { %437 = vrsqrt.f32 %v152_v30 }
 0x182   :  { %v438_v32 = vpop.eup %437 }
 0x183   :  { %v154_v34 = vmul.f32 %v438_v32, %v151_v31 }
 0x185   :  { %v159_v36 = vmul.f32 %v358_v33, %v154_v34 }
 0x187   :  { %v164_v37 = vadd.f32 %v359_v35, %v159_v36 }
 0x189   :  { %v165_v38 = vmax.f32 %v164_v37, 0.0 }
 0x18b   :  { %423 = vmatmul.mubr.f32.vlgmr.msra.gmra.mxu1 %v165_v38 }
 0x24b   :  { %v236_v40 = vpop.f32.mrf.mxu1 }
 0x24c   :  { %v237_v41 = vadd.f32 %v360_v39, %v236_v40 }
 0x24d   :  { %v424_v42 = vpop.f32.mrf.mxu1 }
 0x24e   :  { %240 = vadd.xlane.f32.xlu1 %v237_v41  ;;  %v243_v43 = vmul.f32 %v237_v41, %v237_v41 }
 0x252   :  { %244 = vadd.xlane.f32.xlu1 %v243_v43 }
 0x2d7   :  { %v241_v45 = vpop.xlane.xlu1 %240 }
 0x2d8   :  { %v242_v46 = vmul.f32 0.03125, %v241_v45 }
 0x2da   :  { %v247_v48 = vmul.f32 %v242_v46, %v242_v46  ;;  %v249_v52 = vsub.f32 %v237_v41, %v242_v46 }
 0x2db   :  { %v245_v47 = vpop.xlane.xlu1 %244 }
 0x2dc   :  { %v246_v49 = vmul.f32 0.03125, %v245_v47 }
 0x2de   :  { %v248_v50 = vsub.f32 %v246_v49, %v247_v48 }
 0x2e0   :  { %v250_v51 = vadd.f32 1e-05, %v248_v50 }
 0x2e2   :  { %439 = vrsqrt.f32 %v250_v51 }
 0x2ef   :  { %v440_v53 = vpop.eup %439 }
 0x2f0   :  { %v252_v55 = vmul.f32 %v440_v53, %v249_v52 }
 0x2f2   :  { %v257_v57 = vmul.f32 %v361_v54, %v252_v55 }
 0x2f4   :  { %v262_v58 = vadd.f32 %v362_v56, %v257_v57 }
 0x2f6   :  { %v263_v59 = vmax.f32 %v262_v58, 0.0 }
 0x2f8   :  { %428 = vmatmul.mubr.f32.vlgmr.msra.gmra.mxu0 %v263_v59 }
 0x3b8   :  { %v334_v61 = vpop.f32.mrf.mxu0 }
 0x3b9   :  { %v335_v62 = vadd.f32 %v363_v60, %v334_v61 }
 0x3ba   :  { %v429_v63 = vpop.f32.mrf.mxu0 }
 0x3bb   :  { %441 = vtanh.f32 %v335_v62 }
 0x3c8   :  { %v442_v0 = vpop.eup %441 }
 0x3c9   :  { %339 = vst.msk [vmem:[#allocation7] sm:$0xff] %vm68_vm1, %v442_v0 }
 0x3ca   :  { %494 = shalt.err (!%p491_p0)
}
 0x3cb   :  { %349 = dma.vmem_to_hbm [thread:$0]  %s347_s1, 128, %s571_s2, [#allocation4]  }
 0x3cc   :  { %507 = dma.done.wait [#allocation4], 128  }
 0x3cd   :  { %508 = vsyncadd [#allocation4], 4294967168 }
 0x3ce   :  { %353 = vsyncpa [#allocation3], 1 }
 0x3cf   :  { %354 = vsyncpa [#allocation6], 1 }
 0x3d0   :  { %355 = vsyncpa [#allocation4], 1 }

</bundles_post_ra>
